<compile_context>
chip_gen: v5e
topology: v5e:2x2
jax: 0.10.0
libtpu: 0.0.40
codegen_flags: <defaults>
</compile_context>

<pallas_src>
import jax
import jax.numpy as jnp
from jax.experimental import pallas as pl
from jax.experimental.pallas import tpu as pltpu

LANE = 128
SUBLANE_BF16 = 16  # bf16 packs 2 rows per sublane


def _round_up(n, m):
    return (n + m - 1) // m * m


def _pad_2d(a, shape, dtype):
    out = jnp.zeros(shape, dtype)
    return out.at[: a.shape[0], : a.shape[1]].set(a.astype(dtype))


def _nbytes(arr_or_sds):
    size = 1
    for d in arr_or_sds.shape:
        size *= int(d)
    return size * jnp.zeros((), arr_or_sds.dtype).dtype.itemsize


def _vmem_limit_bytes():
    """Device VMEM capacity minus headroom (compiler scratch / double buffers)."""
    cap = 128 * 1024 * 1024
    try:
        info = pltpu.get_tpu_info()
        cap = int(getattr(info, "vmem_capacity_bytes", cap))
    except Exception:
        pass
    return max(cap - 16 * 1024 * 1024, 32 * 1024 * 1024)


def _fit_rows(h, rows):
    """Match H's row count to the contraction padding of the next layer.

    Extra rows are zero (or multiplied by zero A_hat columns), so this is
    semantics-free; it is a tiny XLA copy vs. the dominant A_hat stream."""
    if h.shape[0] == rows:
        return h
    if h.shape[0] > rows:
        return h[:rows]
    return jnp.pad(h, ((0, rows - h.shape[0]), (0, 0)))


# --------------------------------------------------------------------------- #
# Tiled-path kernels: grid = (row tiles, K tiles), f32 accumulator scratch.
# --------------------------------------------------------------------------- #
def _gcn_agg_kernel(a_ref, hp_ref, b_ref, out_ref, acc_ref):
    """Layer 1 (projection hoisted): out = relu( sum_k A[i,k] @ Hp[k] + b )."""
    @pl.when(pl.program_id(1) == 0)
    def _():
        acc_ref[...] = jnp.zeros_like(acc_ref)

    acc_ref[...] += jnp.dot(a_ref[...], hp_ref[...],
                            preferred_element_type=jnp.float32)

    @pl.when(pl.program_id(1) == pl.num_programs(1) - 1)
    def _():
        out_ref[...] = jnp.maximum(acc_ref[...] + b_ref[...], 0.0
                                   ).astype(out_ref.dtype)


def _gcn_agg_proj_kernel(a_ref, h_ref, w_ref, b_ref, out_ref, acc_ref):
    """Layer 2: out = relu( (sum_k A[i,k] @ H[k]) @ W + b )."""
    @pl.when(pl.program_id(1) == 0)
    def _():
        acc_ref[...] = jnp.zeros_like(acc_ref)

    acc_ref[...] += jnp.dot(a_ref[...], h_ref[...],
                            preferred_element_type=jnp.float32)

    @pl.when(pl.program_id(1) == pl.num_programs(1) - 1)
    def _():
        proj = jnp.dot(acc_ref[...].astype(jnp.bfloat16), w_ref[...],
                       preferred_element_type=jnp.float32)
        out_ref[...] = jnp.maximum(proj + b_ref[...], 0.0).astype(out_ref.dtype)


def _gcn_final_kernel(a_ref, h_ref, w3_ref, b3_ref, wc_ref, bc_ref,
                      h3_ref, z_ref, acc_ref):
    """Layer 3 + Linear classifier fused, same accumulate/epilogue structure."""
    @pl.when(pl.program_id(1) == 0)
    def _():
        acc_ref[...] = jnp.zeros_like(acc_ref)

    acc_ref[...] += jnp.dot(a_ref[...], h_ref[...],
                            preferred_element_type=jnp.float32)

    @pl.when(pl.program_id(1) == pl.num_programs(1) - 1)
    def _():
        h3 = jnp.maximum(
            jnp.dot(acc_ref[...].astype(jnp.bfloat16), w3_ref[...],
                    preferred_element_type=jnp.float32) + b3_ref[...], 0.0)
        z = jnp.dot(h3.astype(jnp.bfloat16), wc_ref[...],
                    preferred_element_type=jnp.float32) + bc_ref[...]
        h3_ref[...] = h3.astype(h3_ref.dtype)
        z_ref[...] = z.astype(z_ref.dtype)


# --------------------------------------------------------------------------- #
# Fused-path kernel: everything VMEM-resident, one call for all 3 layers.
# --------------------------------------------------------------------------- #
def _fused_kernel(a_ref, hp1_ref, b1_ref, w2_ref, b2_ref, w3_ref, b3_ref,
                  wc_ref, bc_ref, h3_ref, z_ref):
    a = a_ref[...]
    h1 = jnp.maximum(
        jnp.dot(a, hp1_ref[...], preferred_element_type=jnp.float32)
        + b1_ref[...], 0.0)
    agg2 = jnp.dot(a, h1.astype(jnp.bfloat16),
                   preferred_element_type=jnp.float32)
    h2 = jnp.maximum(
        jnp.dot(agg2.astype(jnp.bfloat16), w2_ref[...],
                preferred_element_type=jnp.float32) + b2_ref[...], 0.0)
    agg3 = jnp.dot(a, h2.astype(jnp.bfloat16),
                   preferred_element_type=jnp.float32)
    h3 = jnp.maximum(
        jnp.dot(agg3.astype(jnp.bfloat16), w3_ref[...],
                preferred_element_type=jnp.float32) + b3_ref[...], 0.0)
    z = jnp.dot(h3.astype(jnp.bfloat16), wc_ref[...],
                preferred_element_type=jnp.float32) + bc_ref[...]
    h3_ref[...] = h3.astype(h3_ref.dtype)
    z_ref[...] = z.astype(z_ref.dtype)


# --------------------------------------------------------------------------- #
# pallas_call wrappers
# --------------------------------------------------------------------------- #
def _tiled_layer_call(kernel, a_pad, h_pad, dense_inputs, out_shapes, tm, tk,
                      vmem_limit, extra_out_flops):
    rows_pad, k_pad = a_pad.shape
    dh = h_pad.shape[1]
    grid = (rows_pad // tm, k_pad // tk)

    in_specs = [
        pl.BlockSpec((tm, tk), lambda i, k: (i, k)),      # A_hat (row, K) tile
        pl.BlockSpec((tk, dh), lambda i, k: (k, 0)),      # H, K-tiled
    ]
    # Weights / biases: constant index_map -> resident; each is tiny (<=64 KiB)
    # so the default double-buffering is negligible.
    for arr in dense_inputs:
        r, c = arr.shape
        in_specs.append(pl.BlockSpec((r, c), lambda i, k: (0, 0)))

    single = not isinstance(out_shapes, (tuple, list))
    if single:
        out_shapes = (out_shapes,)
    out_specs = tuple(
        pl.BlockSpec((tm, s.shape[1]), lambda i, k: (i, 0)) for s in out_shapes)

    flops = 2 * rows_pad * k_pad * dh + int(extra_out_flops)
    bytes_accessed = (_nbytes(a_pad)
                      + (rows_pad // tm) * _nbytes(h_pad)
                      + sum(_nbytes(s) for s in out_shapes))

    result = pl.pallas_call(
        kernel,
        out_shape=tuple(out_shapes),
        grid_spec=pltpu.PrefetchScalarGridSpec(
            num_scalar_prefetch=0,
            grid=grid,
            in_specs=in_specs,
            out_specs=out_specs,
            scratch_shapes=[pltpu.VMEM((tm, dh), jnp.float32)],
        ),
        compiler_params=pltpu.CompilerParams(
            # "parallel" row tiles only buy anything on v7x (2 TCs);
            # the K axis is a reduction -> "arbitrary".
            dimension_semantics=("parallel", "arbitrary"),
            vmem_limit_bytes=vmem_limit,
        ),
        cost_estimate=pl.CostEstimate(
            flops=int(flops), transcendentals=0,
            bytes_accessed=int(bytes_accessed)),
    )(a_pad, h_pad, *dense_inputs)
    return result[0] if single else result


def _fused_call(a_pad, hp1, b1p, w2p, b2p, w3p, b3p, wcp, bcp,
                d3p, dcp, vmem_limit):
    n_pad = a_pad.shape[0]
    dh = hp1.shape[1]
    inputs = (a_pad, hp1, b1p, w2p, b2p, w3p, b3p, wcp, bcp)
    in_specs = [pl.BlockSpec(arr.shape, lambda i: (0, 0)) for arr in inputs]
    out_shape = (jax.ShapeDtypeStruct((n_pad, d3p), jnp.bfloat16),
                 jax.ShapeDtypeStruct((n_pad, dcp), jnp.float32))
    out_specs = (pl.BlockSpec((n_pad, d3p), lambda i: (0, 0)),
                 pl.BlockSpec((n_pad, dcp), lambda i: (0, 0)))

    flops = 3 * 2 * n_pad * n_pad * dh + 3 * 2 * n_pad * dh * dh
    bytes_accessed = (sum(_nbytes(a) for a in inputs)
                      + sum(_nbytes(s) for s in out_shape))

    return pl.pallas_call(
        _fused_kernel,
        out_shape=out_shape,
        grid_spec=pltpu.PrefetchScalarGridSpec(
            num_scalar_prefetch=0,
            grid=(1,),
            in_specs=in_specs,
            out_specs=out_specs,
        ),
        compiler_params=pltpu.CompilerParams(
            dimension_semantics=("arbitrary",),
            vmem_limit_bytes=vmem_limit,
        ),
        cost_estimate=pl.CostEstimate(
            flops=int(flops), transcendentals=0,
            bytes_accessed=int(bytes_accessed)),
    )(*inputs)


# --------------------------------------------------------------------------- #
# Forward pass
# --------------------------------------------------------------------------- #
def improved_gcn_forward(x, edge_index, params, *, row_tile=None, k_tile=None,
                         force_tiled=False):
    """x: (N, F) float32, edge_index: (2, E) int32.  Returns (h3, z)."""
    N, F = x.shape
    w1, b1, w2, b2, w3, b3, wc, bc = params
    hidden = w1.shape[1]
    d3 = w3.shape[1]
    ncls = wc.shape[1]

    vmem_limit = _vmem_limit_bytes()

    # ---- glue: A_hat = D^-1/2 (A + I) D^-1/2, built once ---------------------
    adj = jnp.zeros((N, N), jnp.float32).at[edge_index[0], edge_index[1]].add(1.0)
    adj = adj + jnp.eye(N, dtype=jnp.float32)         # PyG-style add_self_loops
    deg = jnp.sum(adj, axis=1)
    d_inv_sqrt = jnp.where(deg > 0.0, jax.lax.rsqrt(deg), 0.0)
    a_hat = adj * d_inv_sqrt[:, None] * d_inv_sqrt[None, :]
    # TODO(synk): for large sparse graphs replace the dense O(N^2) A_hat build
    # with a scalar-prefetch (PrefetchScalarGridSpec) gather / SpMM kernel.
    # TODO(synk): A_hat in [0,1] could be stored fp8 on v7x (int8+scale on
    # v5e/v6e) to halve the dominant HBM stream; needs accuracy validation.

    # ---- hoist X @ W1 (associativity) so every layer sees a 128-lane operand -
    xw1 = jnp.dot(x, w1)                              # (N, hidden), trivial FLOPs

    # ---- lane padding of all stored feature dims to 128 (lane-dense stores) --
    dh = _round_up(hidden, LANE)
    d3p = _round_up(d3, LANE)
    dcp = _round_up(ncls, LANE)

    b1p = _pad_2d(b1.reshape(1, -1), (1, dh), jnp.float32)
    b2p = _pad_2d(b2.reshape(1, -1), (1, dh), jnp.float32)
    b3p = _pad_2d(b3.reshape(1, -1), (1, d3p), jnp.float32)
    bcp = _pad_2d(bc.reshape(1, -1), (1, dcp), jnp.float32)
    w2p = _pad_2d(w2, (dh, dh), jnp.bfloat16)
    w3p = _pad_2d(w3, (dh, d3p), jnp.bfloat16)
    wcp = _pad_2d(wc, (d3p, dcp), jnp.bfloat16)

    # ---- fused path: whole padded A_hat + activations fit in VMEM ------------
    n_sq = _round_up(N, LANE)
    fused_bytes = n_sq * n_sq * 2 + 6 * n_sq * dh * 4     # A (bf16) + live acts
    if (not force_tiled) and fused_bytes <= vmem_limit // 2:
        a_pad = _pad_2d(a_hat, (n_sq, n_sq), jnp.bfloat16)
        hp1 = _pad_2d(xw1, (n_sq, dh), jnp.bfloat16)
        h3_pad, z_pad = _fused_call(a_pad, hp1, b1p, w2p, b2p, w3p, b3p,
                                    wcp, bcp, d3p, dcp, vmem_limit)
        # dropout (inference) -> identity
        return h3_pad[:N, :d3].astype(jnp.float32), z_pad[:N, :ncls]

    # ---- tiled path: (row tiles "parallel") x (K reduction "arbitrary") ------
    big_vmem = vmem_limit > 80 * 1024 * 1024          # 128-MiB parts (v5e/v6e)
    tm = row_tile or (512 if big_vmem else 256)
    tm = min(tm, _round_up(N, SUBLANE_BF16))          # bf16: 16-row granularity
    rows_pad = _round_up(N, tm)                       # row padding: tm multiple
    tk = min(k_tile or (2048 if big_vmem else 1024), _round_up(N, LANE))
    k_pad = _round_up(N, tk)                          # contraction padding only

    a_pad = _pad_2d(a_hat, (rows_pad, k_pad), jnp.bfloat16)
    hp1 = _pad_2d(xw1, (k_pad, dh), jnp.bfloat16)

    h1 = _tiled_layer_call(
        _gcn_agg_kernel, a_pad, hp1, (b1p,),
        jax.ShapeDtypeStruct((rows_pad, dh), jnp.bfloat16),
        tm, tk, vmem_limit, extra_out_flops=0)
    # dropout (inference) -> identity
    # TODO(synk): training-mode dropout via pltpu.prng_seed / prng_random_bits.
    h2 = _tiled_layer_call(
        _gcn_agg_proj_kernel, a_pad, _fit_rows(h1, k_pad), (w2p, b2p),
        jax.ShapeDtypeStruct((rows_pad, dh), jnp.bfloat16),
        tm, tk, vmem_limit, extra_out_flops=2 * rows_pad * dh * dh)
    h3_pad, z_pad = _tiled_layer_call(
        _gcn_final_kernel, a_pad, _fit_rows(h2, k_pad), (w3p, b3p, wcp, bcp),
        (jax.ShapeDtypeStruct((rows_pad, d3p), jnp.bfloat16),
         jax.ShapeDtypeStruct((rows_pad, dcp), jnp.float32)),
        tm, tk, vmem_limit,
        extra_out_flops=2 * rows_pad * dh * d3p + 2 * rows_pad * d3p * dcp)

    return h3_pad[:N, :d3].astype(jnp.float32), z_pad[:N, :ncls]


# --------------------------------------------------------------------------- #
# Parameters
# --------------------------------------------------------------------------- #
def make_params(key, num_features, hidden_dim=64, num_classes=4):
    def glorot(k, shape):
        fan_in, fan_out = shape
        lim = (6.0 / (fan_in + fan_out)) ** 0.5
        return jax.random.uniform(k, shape, jnp.float32, -lim, lim)

    ks = jax.random.split(key, 4)
    w1 = glorot(ks[0], (num_features, hidden_dim))
    b1 = jnp.zeros((hidden_dim,), jnp.float32)
    w2 = glorot(ks[1], (hidden_dim, hidden_dim))
    b2 = jnp.zeros((hidden_dim,), jnp.float32)
    w3 = glorot(ks[2], (hidden_dim, 32))
    b3 = jnp.zeros((32,), jnp.float32)
    wc = glorot(ks[3], (32, num_classes))
    bc = jnp.zeros((num_classes,), jnp.float32)
    return (w1, b1, w2, b2, w3, b3, wc, bc)


if __name__ == "__main__":
    key = jax.random.PRNGKey(0)
    k_x, k_p = jax.random.split(key)

    N, F = 8, 16          # 8 nodes, 16 input features
    hidden_dim, num_classes = 64, 4

    x = jax.random.normal(k_x, (N, F), jnp.float32)

    # small ring graph, both directions -> E = 16 edges
    src = jnp.arange(N, dtype=jnp.int32)
    dst = (src + 1) % N
    edge_index = jnp.concatenate(
        [jnp.stack([src, dst], axis=0), jnp.stack([dst, src], axis=0)], axis=1)

    params = make_params(k_p, F, hidden_dim, num_classes)

    # fused (VMEM-resident) path and tiled (row x K grid) path
    h3_f, z_f = improved_gcn_forward(x, edge_index, params)
    h3_t, z_t = improved_gcn_forward(x, edge_index, params, force_tiled=True)
    jax.block_until_ready((h3_f, z_f, h3_t, z_t))

    assert h3_f.shape == (N, 32) and z_f.shape == (N, num_classes)
    assert h3_t.shape == (N, 32) and z_t.shape == (N, num_classes)

    # pure-f32 JAX reference (same dense GCN math)
    adj = jnp.zeros((N, N), jnp.float32).at[edge_index[0], edge_index[1]].add(1.0)
    adj = adj + jnp.eye(N, dtype=jnp.float32)
    deg = adj.sum(1)
    dis = jnp.where(deg > 0, jax.lax.rsqrt(deg), 0.0)
    a_hat = adj * dis[:, None] * dis[None, :]
    w1, b1, w2, b2, w3, b3, wc, bc = params
    h1r = jax.nn.relu(a_hat @ (x @ w1) + b1)
    h2r = jax.nn.relu(a_hat @ h1r @ w2 + b2)
    h3r = jax.nn.relu(a_hat @ h2r @ w3 + b3)
    zr = h3r @ wc + bc

    for got_h3, got_z in ((h3_f, z_f), (h3_t, z_t)):
        assert float(jnp.max(jnp.abs(got_h3 - h3r))) < 5e-2, "h3 mismatch"
        assert float(jnp.max(jnp.abs(got_z - zr))) < 5e-2, "z mismatch"

    print("KERNEL_OK")
</pallas_src>

<mosaic_0001>
module attributes {stable_mosaic.version = 11 : i64} {
  func.func @_fused_kernel(%arg0: i32, %arg1: memref<128x128xbf16, #tpu.memory_space<vmem>>, %arg2: memref<128x128xbf16, #tpu.memory_space<vmem>>, %arg3: memref<1x128xf32, #tpu.memory_space<vmem>>, %arg4: memref<128x128xbf16, #tpu.memory_space<vmem>>, %arg5: memref<1x128xf32, #tpu.memory_space<vmem>>, %arg6: memref<128x128xbf16, #tpu.memory_space<vmem>>, %arg7: memref<1x128xf32, #tpu.memory_space<vmem>>, %arg8: memref<128x128xbf16, #tpu.memory_space<vmem>>, %arg9: memref<1x128xf32, #tpu.memory_space<vmem>>, %arg10: memref<128x128xbf16, #tpu.memory_space<vmem>>, %arg11: memref<128x128xf32, #tpu.memory_space<vmem>>) attributes {dimension_semantics = [#tpu.dimension_semantics<arbitrary>], iteration_bounds = array<i64: 1>, scalar_prefetch = 0 : i64, scratch_operands = 0 : i64, tpu.core_type = #tpu.core_type<tc>, window_params = [{pipeline_mode = #tpu.pipeline_mode<synchronous>, transform_indices = @transform_0, window_bounds = array<i64: 128, 128>}, {pipeline_mode = #tpu.pipeline_mode<synchronous>, transform_indices = @transform_1, window_bounds = array<i64: 128, 128>}, {pipeline_mode = #tpu.pipeline_mode<synchronous>, transform_indices = @transform_2, window_bounds = array<i64: 1, 128>}, {pipeline_mode = #tpu.pipeline_mode<synchronous>, transform_indices = @transform_3, window_bounds = array<i64: 128, 128>}, {pipeline_mode = #tpu.pipeline_mode<synchronous>, transform_indices = @transform_4, window_bounds = array<i64: 1, 128>}, {pipeline_mode = #tpu.pipeline_mode<synchronous>, transform_indices = @transform_5, window_bounds = array<i64: 128, 128>}, {pipeline_mode = #tpu.pipeline_mode<synchronous>, transform_indices = @transform_6, window_bounds = array<i64: 1, 128>}, {pipeline_mode = #tpu.pipeline_mode<synchronous>, transform_indices = @transform_7, window_bounds = array<i64: 128, 128>}, {pipeline_mode = #tpu.pipeline_mode<synchronous>, transform_indices = @transform_8, window_bounds = array<i64: 1, 128>}, {pipeline_mode = #tpu.pipeline_mode<synchronous>, transform_indices = @transform_9, window_bounds = array<i64: 128, 128>}, {pipeline_mode = #tpu.pipeline_mode<synchronous>, transform_indices = @transform_10, window_bounds = array<i64: 128, 128>}]} {
    %c0 = arith.constant 0 : index
    %c0_0 = arith.constant 0 : index
    %0 = vector.load %arg1[%c0, %c0_0] : memref<128x128xbf16, #tpu.memory_space<vmem>>, vector<128x128xbf16>
    %c0_1 = arith.constant 0 : index
    %c0_2 = arith.constant 0 : index
    %1 = vector.load %arg2[%c0_1, %c0_2] : memref<128x128xbf16, #tpu.memory_space<vmem>>, vector<128x128xbf16>
    %cst = arith.constant dense<0.000000e+00> : vector<128x128xf32>
    %2 = tpu.matmul %0, %1, %cst {dimension_numbers = #tpu.dot_dimension_numbers<[1], [0], [0], [1], [0, 0, 1, 1], [], []>} : vector<128x128xbf16>, vector<128x128xbf16>, vector<128x128xf32> -> vector<128x128xf32>
    %c0_3 = arith.constant 0 : index
    %c0_4 = arith.constant 0 : index
    %3 = vector.load %arg3[%c0_3, %c0_4] : memref<1x128xf32, #tpu.memory_space<vmem>>, vector<1x128xf32>
    %4 = vector.broadcast %3 : vector<1x128xf32> to vector<128x128xf32>
    %5 = arith.addf %2, %4 : vector<128x128xf32>
    %cst_5 = arith.constant 0.000000e+00 : f32
    %6 = vector.broadcast %cst_5 : f32 to vector<128x128xf32>
    %7 = arith.maximumf %5, %6 : vector<128x128xf32>
    %8 = arith.truncf %7 : vector<128x128xf32> to vector<128x128xbf16>
    %cst_6 = arith.constant dense<0.000000e+00> : vector<128x128xf32>
    %9 = tpu.matmul %0, %8, %cst_6 {dimension_numbers = #tpu.dot_dimension_numbers<[1], [0], [0], [1], [0, 0, 1, 1], [], []>} : vector<128x128xbf16>, vector<128x128xbf16>, vector<128x128xf32> -> vector<128x128xf32>
    %10 = arith.truncf %9 : vector<128x128xf32> to vector<128x128xbf16>
    %c0_7 = arith.constant 0 : index
    %c0_8 = arith.constant 0 : index
    %11 = vector.load %arg4[%c0_7, %c0_8] : memref<128x128xbf16, #tpu.memory_space<vmem>>, vector<128x128xbf16>
    %cst_9 = arith.constant dense<0.000000e+00> : vector<128x128xf32>
    %12 = tpu.matmul %10, %11, %cst_9 {dimension_numbers = #tpu.dot_dimension_numbers<[1], [0], [0], [1], [0, 0, 1, 1], [], []>} : vector<128x128xbf16>, vector<128x128xbf16>, vector<128x128xf32> -> vector<128x128xf32>
    %c0_10 = arith.constant 0 : index
    %c0_11 = arith.constant 0 : index
    %13 = vector.load %arg5[%c0_10, %c0_11] : memref<1x128xf32, #tpu.memory_space<vmem>>, vector<1x128xf32>
    %14 = vector.broadcast %13 : vector<1x128xf32> to vector<128x128xf32>
    %15 = arith.addf %12, %14 : vector<128x128xf32>
    %cst_12 = arith.constant 0.000000e+00 : f32
    %16 = vector.broadcast %cst_12 : f32 to vector<128x128xf32>
    %17 = arith.maximumf %15, %16 : vector<128x128xf32>
    %18 = arith.truncf %17 : vector<128x128xf32> to vector<128x128xbf16>
    %cst_13 = arith.constant dense<0.000000e+00> : vector<128x128xf32>
    %19 = tpu.matmul %0, %18, %cst_13 {dimension_numbers = #tpu.dot_dimension_numbers<[1], [0], [0], [1], [0, 0, 1, 1], [], []>} : vector<128x128xbf16>, vector<128x128xbf16>, vector<128x128xf32> -> vector<128x128xf32>
    %20 = arith.truncf %19 : vector<128x128xf32> to vector<128x128xbf16>
    %c0_14 = arith.constant 0 : index
    %c0_15 = arith.constant 0 : index
    %21 = vector.load %arg6[%c0_14, %c0_15] : memref<128x128xbf16, #tpu.memory_space<vmem>>, vector<128x128xbf16>
    %cst_16 = arith.constant dense<0.000000e+00> : vector<128x128xf32>
    %22 = tpu.matmul %20, %21, %cst_16 {dimension_numbers = #tpu.dot_dimension_numbers<[1], [0], [0], [1], [0, 0, 1, 1], [], []>} : vector<128x128xbf16>, vector<128x128xbf16>, vector<128x128xf32> -> vector<128x128xf32>
    %c0_17 = arith.constant 0 : index
    %c0_18 = arith.constant 0 : index
    %23 = vector.load %arg7[%c0_17, %c0_18] : memref<1x128xf32, #tpu.memory_space<vmem>>, vector<1x128xf32>
    %24 = vector.broadcast %23 : vector<1x128xf32> to vector<128x128xf32>
    %25 = arith.addf %22, %24 : vector<128x128xf32>
    %cst_19 = arith.constant 0.000000e+00 : f32
    %26 = vector.broadcast %cst_19 : f32 to vector<128x128xf32>
    %27 = arith.maximumf %25, %26 : vector<128x128xf32>
    %28 = arith.truncf %27 : vector<128x128xf32> to vector<128x128xbf16>
    %c0_20 = arith.constant 0 : index
    %c0_21 = arith.constant 0 : index
    %29 = vector.load %arg8[%c0_20, %c0_21] : memref<128x128xbf16, #tpu.memory_space<vmem>>, vector<128x128xbf16>
    %cst_22 = arith.constant dense<0.000000e+00> : vector<128x128xf32>
    %30 = tpu.matmul %28, %29, %cst_22 {dimension_numbers = #tpu.dot_dimension_numbers<[1], [0], [0], [1], [0, 0, 1, 1], [], []>} : vector<128x128xbf16>, vector<128x128xbf16>, vector<128x128xf32> -> vector<128x128xf32>
    %c0_23 = arith.constant 0 : index
    %c0_24 = arith.constant 0 : index
    %31 = vector.load %arg9[%c0_23, %c0_24] : memref<1x128xf32, #tpu.memory_space<vmem>>, vector<1x128xf32>
    %32 = vector.broadcast %31 : vector<1x128xf32> to vector<128x128xf32>
    %33 = arith.addf %30, %32 : vector<128x128xf32>
    %34 = arith.truncf %27 : vector<128x128xf32> to vector<128x128xbf16>
    %c0_25 = arith.constant 0 : index
    %c0_26 = arith.constant 0 : index
    %35 = vector.load %arg10[%c0_25, %c0_26] : memref<128x128xbf16, #tpu.memory_space<vmem>>, vector<128x128xbf16>
    tpu.vector_store %arg10[%c0_25, %c0_26], %34 {strides = array<i32>} : memref<128x128xbf16, #tpu.memory_space<vmem>>, vector<128x128xbf16>,
    %c0_27 = arith.constant 0 : index
    %c0_28 = arith.constant 0 : index
    %36 = vector.load %arg11[%c0_27, %c0_28] : memref<128x128xf32, #tpu.memory_space<vmem>>, vector<128x128xf32>
    tpu.vector_store %arg11[%c0_27, %c0_28], %33 {strides = array<i32>} : memref<128x128xf32, #tpu.memory_space<vmem>>, vector<128x128xf32>,
    return
  }
  func.func @transform_0(%arg0: i32) -> (i32, i32) {
    %c0_i32 = arith.constant 0 : i32
    %c0_i32_0 = arith.constant 0 : i32
    %c0_i32_1 = arith.constant 0 : i32
    return %c0_i32, %c0_i32_0 : i32, i32
  }
  func.func @transform_1(%arg0: i32) -> (i32, i32) {
    %c0_i32 = arith.constant 0 : i32
    %c0_i32_0 = arith.constant 0 : i32
    %c0_i32_1 = arith.constant 0 : i32
    return %c0_i32, %c0_i32_0 : i32, i32
  }
  func.func @transform_2(%arg0: i32) -> (i32, i32) {
    %c0_i32 = arith.constant 0 : i32
    %c0_i32_0 = arith.constant 0 : i32
    %c0_i32_1 = arith.constant 0 : i32
    return %c0_i32, %c0_i32_0 : i32, i32
  }
  func.func @transform_3(%arg0: i32) -> (i32, i32) {
    %c0_i32 = arith.constant 0 : i32
    %c0_i32_0 = arith.constant 0 : i32
    %c0_i32_1 = arith.constant 0 : i32
    return %c0_i32, %c0_i32_0 : i32, i32
  }
  func.func @transform_4(%arg0: i32) -> (i32, i32) {
    %c0_i32 = arith.constant 0 : i32
    %c0_i32_0 = arith.constant 0 : i32
    %c0_i32_1 = arith.constant 0 : i32
    return %c0_i32, %c0_i32_0 : i32, i32
  }
  func.func @transform_5(%arg0: i32) -> (i32, i32) {
    %c0_i32 = arith.constant 0 : i32
    %c0_i32_0 = arith.constant 0 : i32
    %c0_i32_1 = arith.constant 0 : i32
    return %c0_i32, %c0_i32_0 : i32, i32
  }
  func.func @transform_6(%arg0: i32) -> (i32, i32) {
    %c0_i32 = arith.constant 0 : i32
    %c0_i32_0 = arith.constant 0 : i32
    %c0_i32_1 = arith.constant 0 : i32
    return %c0_i32, %c0_i32_0 : i32, i32
  }
  func.func @transform_7(%arg0: i32) -> (i32, i32) {
    %c0_i32 = arith.constant 0 : i32
    %c0_i32_0 = arith.constant 0 : i32
    %c0_i32_1 = arith.constant 0 : i32
    return %c0_i32, %c0_i32_0 : i32, i32
  }
  func.func @transform_8(%arg0: i32) -> (i32, i32) {
    %c0_i32 = arith.constant 0 : i32
    %c0_i32_0 = arith.constant 0 : i32
    %c0_i32_1 = arith.constant 0 : i32
    return %c0_i32, %c0_i32_0 : i32, i32
  }
  func.func @transform_9(%arg0: i32) -> (i32, i32) {
    %c0_i32 = arith.constant 0 : i32
    %c0_i32_0 = arith.constant 0 : i32
    %c0_i32_1 = arith.constant 0 : i32
    return %c0_i32, %c0_i32_0 : i32, i32
  }
  func.func @transform_10(%arg0: i32) -> (i32, i32) {
    %c0_i32 = arith.constant 0 : i32
    %c0_i32_0 = arith.constant 0 : i32
    %c0_i32_1 = arith.constant 0 : i32
    return %c0_i32, %c0_i32_0 : i32, i32
  }
}

</mosaic_0001>

<bundles_post_ra>
// kernel: tpu_custom_call.1
= control target key start
LH: loop header
LB: loop body
LE: loop exit
PB: predicated region body
PF: predicated region fallthrough
CT: control target
= control target key end

     0   :  { %16 = vsyncpa [#allocation3], 0  ;;  %s1590_s0 = inlined_call_operand.hbm [shape: bf16[128,128], index: 0, kind: input, shape index: {}]   ;;  %s1591_s1 = inlined_call_operand.hbm [shape: bf16[128,128], index: 1, kind: input, shape index: {}]   ;;  %s1592_s2 = inlined_call_operand.vmem [shape: f32[1,128], index: 2, kind: input, shape index: {}]   ;;  %s1593_s3 = inlined_call_operand.hbm [shape: bf16[128,128], index: 3, kind: input, shape index: {}]   ;;  %s1594_s4 = inlined_call_operand.vmem [shape: f32[1,128], index: 4, kind: input, shape index: {}]   ;;  %s1595_s5 = inlined_call_operand.hbm [shape: bf16[128,128], index: 5, kind: input, shape index: {}]   ;;  %s1596_s6 = inlined_call_operand.vmem [shape: f32[1,128], index: 6, kind: input, shape index: {}]   ;;  %s1597_s7 = inlined_call_operand.hbm [shape: bf16[128,128], index: 7, kind: input, shape index: {}]   ;;  %s1598_s8 = inlined_call_operand.vmem [shape: f32[1,128], index: 8, kind: input, shape index: {}]   ;;  %s1599_s9 = inlined_call_operand.hbm [shape: bf16[128,128], index: 9, kind: output, shape index: {0}]   ;;  %s1600_s10 = inlined_call_operand.hbm [shape: f32[128,128], index: 10, kind: output, shape index: {1}]  }
   0x1   :  { %17 = vsyncpa [#allocation6], 0 }
   0x2   :  { %18 = vsyncpa [#allocation9], 0 }
   0x3   :  { %19 = vsyncpa [#allocation4], 0 }
   0x4   :  { %20 = vsyncpa [#allocation13], 0  ;;  %s38_s15 = sshll.u32 %s1591_s1, 4  ;;  %s1415_s16 = smov [#allocation5]   ;;  %s39_s15 = int_to_ptr.hbm [resolvable:$true] %s38_s15 }
   0x5   :  { %s40_s17 = sshll.u32 %s1415_s16, 4  ;;  %s68_s20 = sshll.u32 %s1595_s5, 4  ;;  %s41_s17 = int_to_ptr.vmem [resolvable:$true] %s40_s17  ;;  %s69_s20 = int_to_ptr.hbm [resolvable:$true] %s68_s20 }
   0x6   :  { %s1416_s21 = smov 64   ;;  %s1417_s22 = smov 4  }
   0x7   :  { %46 = dma.hbm_to_vmem [thread:$0]  %s39_s15, 1024, %s41_s17, [#allocation6], %s1416_s21, %s1416_s21, %s1417_s22  }
   0x8   :  { %s1418_s23 = smov [#allocation8]   ;;  %s25_s1 = sshll.u32 %s1590_s0, 4  ;;  %s26_s1 = int_to_ptr.hbm [resolvable:$true] %s25_s1 }
   0x9   :  { %s70_s24 = sshll.u32 %s1418_s23, 4  ;;  %s53_s28 = sshll.u32 %s1593_s3, 4  ;;  %s71_s24 = int_to_ptr.vmem [resolvable:$true] %s70_s24  ;;  %s54_s28 = int_to_ptr.hbm [resolvable:$true] %s53_s28 }
   0xa   :  { %76 = dma.hbm_to_vmem [thread:$0]  %s69_s20, 1024, %s71_s24, [#allocation9], %s1416_s21, %s1416_s21, %s1417_s22  }
   0xb   :  { %s1419_s29 = smov [#allocation2]   ;;  %s1420_s11 = smov [#allocation7]  }
   0xc   :  { %s27_s30 = sshll.u32 %s1419_s29, 4  ;;  %s55_s0 = sshll.u32 %s1420_s11, 4  ;;  %s28_s30 = int_to_ptr.vmem [resolvable:$true] %s27_s30  ;;  %s56_s0 = int_to_ptr.vmem [resolvable:$true] %s55_s0 }
   0xd   :  { %33 = dma.hbm_to_vmem [thread:$0]  %s26_s1, 1024, %s28_s30, [#allocation3], %s1416_s21, %s1416_s21, %s1417_s22  }
   0xe   :  { %s83_s14 = sshll.u32 %s1597_s7, 4  ;;  %s1421_s3 = smov [#allocation10]   ;;  %s84_s14 = int_to_ptr.hbm [resolvable:$true] %s83_s14 }
   0xf   :  { %61 = dma.hbm_to_vmem [thread:$0]  %s54_s28, 1024, %s56_s0, [#allocation6], %s1416_s21, %s1416_s21, %s1417_s22  }
  0x10   :  { %s85_s15 = sshll.u32 %s1421_s3, 4  ;;  %s86_s15 = int_to_ptr.vmem [resolvable:$true] %s85_s15 }
  0x11   :  { %91 = dma.hbm_to_vmem [thread:$0]  %s84_s14, 1024, %s86_s15, [#allocation9], %s1416_s21, %s1416_s21, %s1417_s22  }
  0x12   :  { %1405 = dma.done.wait [#allocation3], 1024  }
  0x13   :  { %1406 = vsyncadd [#allocation3], 4294966272 }
  0x14   :  { %1407 = dma.done.wait [#allocation6], 2048  }
  0x15   :  { %1408 = vsyncadd [#allocation6], 4294965248 }
  0x16   :  { %1409 = dma.done.wait [#allocation9], 2048  }
  0x17   :  { %1410 = vsyncadd [#allocation9], 4294965248  ;;  %v1134_v0 = vld [vmem:[#allocation5 + $0x38] sm:$0xff]  ;;  %v1133_v1 = vld [vmem:[#allocation5 + $0x30] sm:$0xff]  ;;  %s926_s24 = sshll.u32 %s1599_s9, 4  ;;  %s939_s1 = sshll.u32 %s1600_s10, 4  ;;  %s927_s24 = int_to_ptr.hbm [resolvable:$true] %s926_s24  ;;  %s940_s1 = int_to_ptr.hbm [resolvable:$true] %s939_s1 }
  0x18   :  { %1206 = vmatpush.bf16.msra.mxu2 %v1134_v0  ;;  %246 = vmatpush.bf16.msra.mxu0 %v1134_v0  ;;  %v1132_v2 = vld [vmem:[#allocation5 + $0x28] sm:$0xff]  ;;  %v1131_v3 = vld [vmem:[#allocation5 + $0x20] sm:$0xff]  ;;  %v1130_v4 = vld [vmem:[#allocation5 + $0x18] sm:$0xff]  ;;  %s1424_s5 = smov 128   ;;  %s1425_s27 = smov 8  }
  0x19   :  { %v1129_v5 = vld [vmem:[#allocation5 + $0x10] sm:$0xff]  ;;  %v1128_v6 = vld [vmem:[#allocation5 + $0x8] sm:$0xff]  ;;  %v1127_v7 = vld [vmem:[#allocation5] sm:$0xff] }
  0x1a   :  { %v1511_v8 = vld [vmem:[#allocation2 + $0x20] sm:$0xff]  ;;  %v1517_v10 = vld [vmem:[#allocation2 + $0x28] sm:$0xff]  ;;  %v1523_v12 = vld [vmem:[#allocation2 + $0x30] sm:$0xff] }
  0x1b   :  { %v1513_v9 = vld [vmem:[#allocation2] sm:$0xff]  ;;  %v1519_v11 = vld [vmem:[#allocation2 + $0x8] sm:$0xff]  ;;  %v1525_v13 = vld [vmem:[#allocation2 + $0x10] sm:$0xff] }
  0x1c   :  { %1207 = vmatpush.bf16.msra.mxu2 %v1133_v1  ;;  %247 = vmatpush.bf16.msra.mxu0 %v1133_v1  ;;  %v1529_v14 = vld [vmem:[#allocation2 + $0x38] sm:$0xff]  ;;  %v1233_v29 = vld [vmem:[%s1592_s2] ss:$0 sm:$0xff] }
  0x1d   :  { %v1531_v15 = vld [vmem:[#allocation2 + $0x18] sm:$0xff] }
  0x20   :  { %1208 = vmatpush.bf16.msra.mxu2 %v1132_v2  ;;  %248 = vmatpush.bf16.msra.mxu0 %v1132_v2 }
  0x24   :  { %1209 = vmatpush.bf16.msra.mxu2 %v1131_v3  ;;  %249 = vmatpush.bf16.msra.mxu0 %v1131_v3 }
  0x28   :  { %1210 = vmatpush.bf16.msra.mxu2 %v1130_v4  ;;  %250 = vmatpush.bf16.msra.mxu0 %v1130_v4 }
  0x2c   :  { %1211 = vmatpush.bf16.msra.mxu2 %v1129_v5  ;;  %251 = vmatpush.bf16.msra.mxu0 %v1129_v5 }
  0x30   :  { %1212 = vmatpush.bf16.msra.mxu2 %v1128_v6  ;;  %252 = vmatpush.bf16.msra.mxu0 %v1128_v6 }
  0x34   :  { %1213 = vmatpush.bf16.msra.mxu2 %v1127_v7  ;;  %253 = vmatpush.bf16.msra.mxu0 %v1127_v7 }
  0x37   :  { %274 = vmatmul.bf16.vlgmr.msra.gmra.mxu2 %v1511_v8  ;;  %254 = vmatmul.bf16.vlgmr.msra.gmra.mxu0 %v1513_v9 }
  0x47   :  { %279 = vmatmul.bf16.gmra.mxu2 %v1517_v10  ;;  %259 = vmatmul.bf16.gmra.mxu0 %v1519_v11 }
  0x57   :  { %284 = vmatmul.bf16.gmra.mxu2 %v1523_v12  ;;  %264 = vmatmul.bf16.gmra.mxu0 %v1525_v13 }
  0x67   :  { %289 = vmatmul.bf16.gmra.mxu2 %v1529_v14  ;;  %269 = vmatmul.bf16.gmra.mxu0 %v1531_v15 }
  0xb4   :  { %v255_v16 = vpop.f32.mrf.mxu0 }
  0xb5   :  { %v256_v0 = vadd.f32 %v1233_v29, %v255_v16  ;;  %v1142_v16 = vld [vmem:[#allocation7 + $0x38] sm:$0xff] }
  0xb6   :  { %444 = vmatpush.bf16.msrb.mxu2 %v1142_v16 }
  0xb7   :  { %v295_v5 = vmax.f32 %v256_v0, 0.0 }
  0xba   :  { %v275_v17 = vpop.f32.mrf.mxu2 }
  0xbb   :  { %v276_v46 = vadd.f32 %v1233_v29, %v275_v17 }
  0xbc   :  { %v257_v18 = vpop.f32.mrf.mxu0 }
  0xbd   :  { %v303_v53 = vmax.f32 %v276_v46, 0.0  ;;  %v258_v1 = vadd.f32 %v1233_v29, %v257_v18  ;;  %v1141_v18 = vld [vmem:[#allocation7 + $0x30] sm:$0xff] }
  0xbe   :  { %445 = vmatpush.bf16.msrb.mxu2 %v1141_v18 }
  0xbf   :  { %v296_v6 = vmax.f32 %v258_v1, 0.0 }
  0xc1   :  { %v311_v17 = vpack.c.bf16 %v296_v6, %v295_v5 }
  0xc2   :  { %v277_v19 = vpop.f32.mrf.mxu2 }
  0xc3   :  { %v278_v43 = vadd.f32 %v1233_v29, %v277_v19  ;;  %v1140_v19 = vld [vmem:[#allocation7 + $0x28] sm:$0xff] }
  0xc4   :  { %v260_v21 = vpop.f32.mrf.mxu0  ;;  %446 = vmatpush.bf16.msrb.mxu2 %v1140_v19 }
  0xc5   :  { %v304_v49 = vmax.f32 %v278_v43, 0.0  ;;  %v261_v59 = vadd.f32 %v1233_v29, %v260_v21  ;;  %v1138_v21 = vld [vmem:[#allocation7 + $0x18] sm:$0xff] }
  0xc7   :  { %v315_v54 = vpack.c.bf16 %v304_v49, %v303_v53  ;;  %v297_v2 = vmax.f32 %v261_v59, 0.0 }
  0xca   :  { %v280_v20 = vpop.f32.mrf.mxu2 }
  0xcb   :  { %v281_v41 = vadd.f32 %v1233_v29, %v280_v20  ;;  %v1139_v20 = vld [vmem:[#allocation7 + $0x20] sm:$0xff] }
  0xcc   :  { %v262_v23 = vpop.f32.mrf.mxu0  ;;  %447 = vmatpush.bf16.msrb.mxu2 %v1139_v20 }
  0xcd   :  { %v305_v48 = vmax.f32 %v281_v41, 0.0  ;;  %v263_v60 = vadd.f32 %v1233_v29, %v262_v23  ;;  %v1136_v23 = vld [vmem:[#allocation7 + $0x8] sm:$0xff] }
  0xcf   :  { %v298_v3 = vmax.f32 %v263_v60, 0.0 }
  0xd0   :  { %448 = vmatpush.bf16.msrb.mxu2 %v1138_v21 }
  0xd1   :  { %v312_v7 = vpack.c.bf16 %v298_v3, %v297_v2 }
  0xd2   :  { %v282_v22 = vpop.f32.mrf.mxu2 }
  0xd3   :  { %v283_v38 = vadd.f32 %v1233_v29, %v282_v22  ;;  %v1137_v22 = vld [vmem:[#allocation7 + $0x10] sm:$0xff] }
  0xd4   :  { %v265_v25 = vpop.f32.mrf.mxu0  ;;  %449 = vmatpush.bf16.msrb.mxu2 %v1137_v22 }
  0xd5   :  { %v306_v44 = vmax.f32 %v283_v38, 0.0  ;;  %v266_v55 = vadd.f32 %v1233_v29, %v265_v25 }
  0xd7   :  { %v316_v52 = vpack.c.bf16 %v306_v44, %v305_v48  ;;  %v299_v61 = vmax.f32 %v266_v55, 0.0 }
  0xd8   :  { %450 = vmatpush.bf16.msrb.mxu2 %v1136_v23 }
  0xda   :  { %v285_v24 = vpop.f32.mrf.mxu2 }
  0xdb   :  { %v286_v35 = vadd.f32 %v1233_v29, %v285_v24  ;;  %v1135_v24 = vld [vmem:[#allocation7] sm:$0xff] }
  0xdc   :  { %v267_v27 = vpop.f32.mrf.mxu0  ;;  %451 = vmatpush.bf16.msrb.mxu2 %v1135_v24 }
  0xdd   :  { %v307_v42 = vmax.f32 %v286_v35, 0.0  ;;  %v268_v56 = vadd.f32 %v1233_v29, %v267_v27 }
  0xdf   :  { %v300_v62 = vmax.f32 %v268_v56, 0.0 }
  0xe1   :  { %v313_v4 = vpack.c.bf16 %v300_v62, %v299_v61 }
  0xe2   :  { %v287_v26 = vpop.f32.mrf.mxu2 }
  0xe3   :  { %v288_v33 = vadd.f32 %v1233_v29, %v287_v26 }
  0xe4   :  { %v270_v31 = vpop.f32.mrf.mxu0 }
  0xe5   :  { %v308_v39 = vmax.f32 %v288_v33, 0.0  ;;  %v271_v50 = vadd.f32 %v1233_v29, %v270_v31 }
  0xe7   :  { %v317_v45 = vpack.c.bf16 %v308_v39, %v307_v42  ;;  %v301_v57 = vmax.f32 %v271_v50, 0.0  ;;  %v1234_v50 = vld [vmem:[%s1594_s4] ss:$0 sm:$0xff] }
  0xea   :  { %v290_v28 = vpop.f32.mrf.mxu2 }
  0xeb   :  { %v291_v30 = vadd.f32 %v1233_v29, %v290_v28 }
  0xec   :  { %v272_v47 = vpop.f32.mrf.mxu0 }
  0xed   :  { %v309_v36 = vmax.f32 %v291_v30, 0.0  ;;  %v273_v51 = vadd.f32 %v1233_v29, %v272_v47 }
  0xef   :  { %v302_v58 = vmax.f32 %v273_v51, 0.0 }
  0xf1   :  { %v314_v63 = vpack.c.bf16 %v302_v58, %v301_v57 }
  0xf2   :  { %v292_v32 = vpop.f32.mrf.mxu2 }
  0xf3   :  { %v293_v34 = vadd.f32 %v1233_v29, %v292_v32 }
  0xf5   :  { %v310_v37 = vmax.f32 %v293_v34, 0.0 }
  0xf7   :  { %v318_v40 = vpack.c.bf16 %v310_v37, %v309_v36 }
  0xf9   :  { %319 = vmatpush.bf16.msra.mxu1 %v318_v40  ;;  %1214 = vmatpush.bf16.msra.mxu3 %v318_v40 }
  0xfd   :  { %320 = vmatpush.bf16.msra.mxu1 %v317_v45  ;;  %1215 = vmatpush.bf16.msra.mxu3 %v317_v45 }
 0x101   :  { %321 = vmatpush.bf16.msra.mxu1 %v316_v52  ;;  %1216 = vmatpush.bf16.msra.mxu3 %v316_v52 }
 0x105   :  { %322 = vmatpush.bf16.msra.mxu1 %v315_v54  ;;  %1217 = vmatpush.bf16.msra.mxu3 %v315_v54 }
 0x109   :  { %323 = vmatpush.bf16.msra.mxu1 %v314_v63  ;;  %1218 = vmatpush.bf16.msra.mxu3 %v314_v63 }
 0x10d   :  { %324 = vmatpush.bf16.msra.mxu1 %v313_v4  ;;  %1219 = vmatpush.bf16.msra.mxu3 %v313_v4 }
 0x111   :  { %325 = vmatpush.bf16.msra.mxu1 %v312_v7  ;;  %1220 = vmatpush.bf16.msra.mxu3 %v312_v7 }
 0x115   :  { %326 = vmatpush.bf16.msra.mxu1 %v311_v17  ;;  %1221 = vmatpush.bf16.msra.mxu3 %v311_v17 }
 0x118   :  { %327 = vmatmul.bf16.vlgmr.msra.gmra.mxu1 %v1513_v9  ;;  %347 = vmatmul.bf16.vlgmr.msra.gmra.mxu3 %v1511_v8 }
 0x128   :  { %332 = vmatmul.bf16.gmra.mxu1 %v1519_v11  ;;  %352 = vmatmul.bf16.gmra.mxu3 %v1517_v10 }
 0x138   :  { %337 = vmatmul.bf16.gmra.mxu1 %v1525_v13  ;;  %357 = vmatmul.bf16.gmra.mxu3 %v1523_v12 }
 0x148   :  { %342 = vmatmul.bf16.gmra.mxu1 %v1531_v15  ;;  %362 = vmatmul.bf16.gmra.mxu3 %v1529_v14 }
 0x195   :  { %v328_v25 = vpop.f32.mrf.mxu1 }
 0x19b   :  { %v348_v35 = vpop.f32.mrf.mxu3 }
 0x19d   :  { %v330_v26 = vpop.f32.mrf.mxu1 }
 0x19e   :  { %v368_v27 = vpack.c.bf16 %v330_v26, %v328_v25 }
 0x1a0   :  { %452 = vmatmul.bf16.vlgmr.msrb.gmra.mxu2 %v368_v27 }
 0x1a3   :  { %v350_v38 = vpop.f32.mrf.mxu3 }
 0x1a4   :  { %v372_v40 = vpack.c.bf16 %v350_v38, %v348_v35 }
 0x1a5   :  { %v333_v28 = vpop.f32.mrf.mxu1 }
 0x1ab   :  { %v353_v39 = vpop.f32.mrf.mxu3 }
 0x1ad   :  { %v335_v29 = vpop.f32.mrf.mxu1 }
 0x1ae   :  { %v369_v30 = vpack.c.bf16 %v335_v29, %v333_v28 }
 0x1b0   :  { %457 = vmatmul.bf16.gmra.mxu2 %v369_v30 }
 0x1b3   :  { %v355_v41 = vpop.f32.mrf.mxu3 }
 0x1b4   :  { %v373_v43 = vpack.c.bf16 %v355_v41, %v353_v39 }
 0x1b5   :  { %v338_v31 = vpop.f32.mrf.mxu1 }
 0x1bb   :  { %v358_v42 = vpop.f32.mrf.mxu3 }
 0x1bd   :  { %v340_v32 = vpop.f32.mrf.mxu1 }
 0x1be   :  { %v370_v33 = vpack.c.bf16 %v340_v32, %v338_v31 }
 0x1c0   :  { %462 = vmatmul.bf16.gmra.mxu2 %v370_v33 }
 0x1c3   :  { %v360_v44 = vpop.f32.mrf.mxu3 }
 0x1c4   :  { %v374_v45 = vpack.c.bf16 %v360_v44, %v358_v42 }
 0x1c5   :  { %v343_v34 = vpop.f32.mrf.mxu1 }
 0x1cb   :  { %v363_v46 = vpop.f32.mrf.mxu3 }
 0x1cd   :  { %v345_v36 = vpop.f32.mrf.mxu1 }
 0x1ce   :  { %v371_v37 = vpack.c.bf16 %v345_v36, %v343_v34 }
 0x1d0   :  { %467 = vmatmul.bf16.gmra.mxu2 %v371_v37 }
 0x1d3   :  { %v365_v47 = vpop.f32.mrf.mxu3 }
 0x1d4   :  { %v375_v48 = vpack.c.bf16 %v365_v47, %v363_v46 }
 0x1e0   :  { %472 = vmatmul.bf16.gmra.mxu2 %v372_v40 }
 0x1f0   :  { %477 = vmatmul.bf16.gmra.mxu2 %v373_v43 }
 0x200   :  { %482 = vmatmul.bf16.gmra.mxu2 %v374_v45 }
 0x210   :  { %487 = vmatmul.bf16.gmra.mxu2 %v375_v48 }
 0x223   :  { %v453_v49 = vpop.f32.mrf.mxu2 }
 0x224   :  { %v454_v51 = vadd.f32 %v1234_v50, %v453_v49 }
 0x226   :  { %v493_v54 = vmax.f32 %v454_v51, 0.0  ;;  %v1149_v51 = vld [vmem:[#allocation8 + $0x30] sm:$0xff] }
 0x22b   :  { %v455_v52 = vpop.f32.mrf.mxu2 }
 0x22c   :  { %v456_v53 = vadd.f32 %v1234_v50, %v455_v52  ;;  %v1148_v52 = vld [vmem:[#allocation8 + $0x28] sm:$0xff] }
 0x22e   :  { %v494_v55 = vmax.f32 %v456_v53, 0.0  ;;  %v1147_v53 = vld [vmem:[#allocation8 + $0x20] sm:$0xff] }
 0x230   :  { %v509_v56 = vpack.c.bf16 %v494_v55, %v493_v54  ;;  %v1146_v54 = vld [vmem:[#allocation8 + $0x18] sm:$0xff] }
 0x233   :  { %v458_v57 = vpop.f32.mrf.mxu2 }
 0x234   :  { %v459_v58 = vadd.f32 %v1234_v50, %v458_v57 }
 0x236   :  { %v495_v61 = vmax.f32 %v459_v58, 0.0 }
 0x23b   :  { %v460_v59 = vpop.f32.mrf.mxu2 }
 0x23c   :  { %v461_v60 = vadd.f32 %v1234_v50, %v460_v59 }
 0x23e   :  { %v496_v62 = vmax.f32 %v461_v60, 0.0 }
 0x240   :  { %v510_v63 = vpack.c.bf16 %v496_v62, %v495_v61 }
 0x243   :  { %v463_v0 = vpop.f32.mrf.mxu2 }
 0x244   :  { %v464_v1 = vadd.f32 %v1234_v50, %v463_v0 }
 0x246   :  { %v497_v4 = vmax.f32 %v464_v1, 0.0 }
 0x24b   :  { %v465_v2 = vpop.f32.mrf.mxu2 }
 0x24c   :  { %v466_v3 = vadd.f32 %v1234_v50, %v465_v2  ;;  %v1158_v2 = vld [vmem:[#allocation10 + $0x38] sm:$0xff] }
 0x24d   :  { %839 = vmatpush.bf16.msrb.mxu1 %v1158_v2 }
 0x24e   :  { %v498_v5 = vmax.f32 %v466_v3, 0.0 }
 0x250   :  { %v511_v6 = vpack.c.bf16 %v498_v5, %v497_v4  ;;  %v1157_v5 = vld [vmem:[#allocation10 + $0x30] sm:$0xff] }
 0x251   :  { %840 = vmatpush.bf16.msrb.mxu1 %v1157_v5 }
 0x253   :  { %v468_v7 = vpop.f32.mrf.mxu2 }
 0x254   :  { %v469_v17 = vadd.f32 %v1234_v50, %v468_v7 }
 0x256   :  { %v499_v19 = vmax.f32 %v469_v17, 0.0  ;;  %v1155_v17 = vld [vmem:[#allocation10 + $0x20] sm:$0xff] }
 0x25b   :  { %v470_v16 = vpop.f32.mrf.mxu2 }
 0x25c   :  { %v471_v18 = vadd.f32 %v1234_v50, %v470_v16 }
 0x25e   :  { %v500_v20 = vmax.f32 %v471_v18, 0.0 }
 0x260   :  { %v512_v21 = vpack.c.bf16 %v500_v20, %v499_v19  ;;  %v1154_v19 = vld [vmem:[#allocation10 + $0x18] sm:$0xff]  ;;  %v1153_v20 = vld [vmem:[#allocation10 + $0x10] sm:$0xff] }
 0x263   :  { %v473_v22 = vpop.f32.mrf.mxu2 }
 0x264   :  { %v474_v44 = vadd.f32 %v1234_v50, %v473_v22  ;;  %v1152_v22 = vld [vmem:[#allocation10 + $0x8] sm:$0xff] }
 0x266   :  { %v501_v48 = vmax.f32 %v474_v44, 0.0 }
 0x26b   :  { %v475_v23 = vpop.f32.mrf.mxu2 }
 0x26c   :  { %v476_v41 = vadd.f32 %v1234_v50, %v475_v23  ;;  %v1151_v23 = vld [vmem:[#allocation10] sm:$0xff] }
 0x26e   :  { %v502_v46 = vmax.f32 %v476_v41, 0.0 }
 0x270   :  { %v513_v49 = vpack.c.bf16 %v502_v46, %v501_v48 }
 0x273   :  { %v478_v24 = vpop.f32.mrf.mxu2 }
 0x274   :  { %v479_v39 = vadd.f32 %v1234_v50, %v478_v24 }
 0x276   :  { %v503_v45 = vmax.f32 %v479_v39, 0.0 }
 0x27b   :  { %v480_v25 = vpop.f32.mrf.mxu2 }
 0x27c   :  { %v481_v36 = vadd.f32 %v1234_v50, %v480_v25 }
 0x27e   :  { %v504_v42 = vmax.f32 %v481_v36, 0.0 }
 0x280   :  { %v514_v47 = vpack.c.bf16 %v504_v42, %v503_v45 }
 0x283   :  { %v483_v26 = vpop.f32.mrf.mxu2 }
 0x284   :  { %v484_v33 = vadd.f32 %v1234_v50, %v483_v26  ;;  %v1560_v26 = vld [vmem:[%s1596_s6] ss:$0 sm:$0xff]  ;;  %s1422_s6 = smov [#allocation11]  }
 0x285   :  { %s924_s19 = sshll.u32 %s1422_s6, 4  ;;  %s925_s19 = int_to_ptr.vmem [resolvable:$true] %s924_s19 }
 0x286   :  { %v505_v40 = vmax.f32 %v484_v33, 0.0 }
 0x28b   :  { %v485_v27 = vpop.f32.mrf.mxu2 }
 0x28c   :  { %v486_v31 = vadd.f32 %v1234_v50, %v485_v27 }
 0x28e   :  { %v506_v37 = vmax.f32 %v486_v31, 0.0 }
 0x290   :  { %v515_v43 = vpack.c.bf16 %v506_v37, %v505_v40 }
 0x293   :  { %v488_v28 = vpop.f32.mrf.mxu2 }
 0x294   :  { %v489_v29 = vadd.f32 %v1234_v50, %v488_v28 }
 0x296   :  { %v507_v34 = vmax.f32 %v489_v29, 0.0 }
 0x29b   :  { %v490_v30 = vpop.f32.mrf.mxu2 }
 0x29c   :  { %v491_v32 = vadd.f32 %v1234_v50, %v490_v30  ;;  %v1150_v50 = vld [vmem:[#allocation8 + $0x38] sm:$0xff] }
 0x29d   :  { %642 = vmatpush.bf16.msrb.mxu0 %v1150_v50 }
 0x29e   :  { %v508_v35 = vmax.f32 %v491_v32, 0.0 }
 0x2a0   :  { %v516_v38 = vpack.c.bf16 %v508_v35, %v507_v34 }
 0x2a1   :  { %643 = vmatpush.bf16.msrb.mxu0 %v1149_v51 }
 0x2a2   :  { %517 = vmatpush.bf16.msrb.mxu3 %v516_v38 }
 0x2a5   :  { %644 = vmatpush.bf16.msrb.mxu0 %v1148_v52 }
 0x2a6   :  { %518 = vmatpush.bf16.msrb.mxu3 %v515_v43 }
 0x2a9   :  { %645 = vmatpush.bf16.msrb.mxu0 %v1147_v53 }
 0x2aa   :  { %519 = vmatpush.bf16.msrb.mxu3 %v514_v47 }
 0x2ad   :  { %646 = vmatpush.bf16.msrb.mxu0 %v1146_v54 }
 0x2ae   :  { %520 = vmatpush.bf16.msrb.mxu3 %v513_v49 }
 0x2b2   :  { %521 = vmatpush.bf16.msrb.mxu3 %v512_v21 }
 0x2b6   :  { %522 = vmatpush.bf16.msrb.mxu3 %v511_v6  ;;  %v1156_v6 = vld [vmem:[#allocation10 + $0x28] sm:$0xff] }
 0x2b7   :  { %841 = vmatpush.bf16.msrb.mxu1 %v1156_v6 }
 0x2ba   :  { %523 = vmatpush.bf16.msrb.mxu3 %v510_v63 }
 0x2bb   :  { %842 = vmatpush.bf16.msrb.mxu1 %v1155_v17 }
 0x2be   :  { %524 = vmatpush.bf16.msrb.mxu3 %v509_v56 }
 0x2bf   :  { %843 = vmatpush.bf16.msrb.mxu1 %v1154_v19 }
 0x2c1   :  { %525 = vmatmul.bf16.vlgmr.msrb.gmra.mxu3 %v1513_v9  ;;  %v1145_v9 = vld [vmem:[#allocation8 + $0x10] sm:$0xff] }
 0x2c2   :  { %647 = vmatpush.bf16.msrb.mxu0 %v1145_v9 }
 0x2c3   :  { %844 = vmatpush.bf16.msrb.mxu1 %v1153_v20 }
 0x2c7   :  { %845 = vmatpush.bf16.msrb.mxu1 %v1152_v22 }
 0x2cb   :  { %846 = vmatpush.bf16.msrb.mxu1 %v1151_v23 }
 0x2d1   :  { %530 = vmatmul.bf16.gmra.mxu3 %v1519_v11  ;;  %v1144_v11 = vld [vmem:[#allocation8 + $0x8] sm:$0xff] }
 0x2d2   :  { %648 = vmatpush.bf16.msrb.mxu0 %v1144_v11 }
 0x2e1   :  { %535 = vmatmul.bf16.gmra.mxu3 %v1525_v13  ;;  %v1143_v13 = vld [vmem:[#allocation8] sm:$0xff] }
 0x2e2   :  { %649 = vmatpush.bf16.msrb.mxu0 %v1143_v13 }
 0x2f1   :  { %540 = vmatmul.bf16.gmra.mxu3 %v1531_v15 }
 0x301   :  { %545 = vmatmul.bf16.gmra.mxu3 %v1511_v8 }
 0x311   :  { %550 = vmatmul.bf16.gmra.mxu3 %v1517_v10 }
 0x321   :  { %555 = vmatmul.bf16.gmra.mxu3 %v1523_v12 }
 0x331   :  { %560 = vmatmul.bf16.gmra.mxu3 %v1529_v14 }
 0x344   :  { %v526_v8 = vpop.f32.mrf.mxu3 }
 0x34c   :  { %v528_v15 = vpop.f32.mrf.mxu3 }
 0x34d   :  { %v566_v55 = vpack.c.bf16 %v528_v15, %v526_v8 }
 0x34f   :  { %650 = vmatmul.bf16.vlgmr.msrb.gmra.mxu0 %v566_v55 }
 0x354   :  { %v531_v10 = vpop.f32.mrf.mxu3 }
 0x35c   :  { %v533_v56 = vpop.f32.mrf.mxu3 }
 0x35d   :  { %v567_v57 = vpack.c.bf16 %v533_v56, %v531_v10 }
 0x35f   :  { %655 = vmatmul.bf16.gmra.mxu0 %v567_v57 }
 0x364   :  { %v536_v58 = vpop.f32.mrf.mxu3 }
 0x36c   :  { %v538_v59 = vpop.f32.mrf.mxu3 }
 0x36d   :  { %v568_v60 = vpack.c.bf16 %v538_v59, %v536_v58 }
 0x36f   :  { %660 = vmatmul.bf16.gmra.mxu0 %v568_v60 }
 0x374   :  { %v541_v12 = vpop.f32.mrf.mxu3 }
 0x37c   :  { %v543_v61 = vpop.f32.mrf.mxu3 }
 0x37d   :  { %v569_v62 = vpack.c.bf16 %v543_v61, %v541_v12 }
 0x37f   :  { %665 = vmatmul.bf16.gmra.mxu0 %v569_v62 }
 0x384   :  { %v546_v63 = vpop.f32.mrf.mxu3 }
 0x38c   :  { %v548_v0 = vpop.f32.mrf.mxu3 }
 0x38d   :  { %v570_v1 = vpack.c.bf16 %v548_v0, %v546_v63 }
 0x38f   :  { %670 = vmatmul.bf16.gmra.mxu0 %v570_v1 }
 0x394   :  { %v551_v14 = vpop.f32.mrf.mxu3 }
 0x39c   :  { %v553_v3 = vpop.f32.mrf.mxu3 }
 0x39d   :  { %v571_v4 = vpack.c.bf16 %v553_v3, %v551_v14 }
 0x39f   :  { %675 = vmatmul.bf16.gmra.mxu0 %v571_v4 }
 0x3a4   :  { %v556_v7 = vpop.f32.mrf.mxu3 }
 0x3ac   :  { %v558_v16 = vpop.f32.mrf.mxu3 }
 0x3ad   :  { %v572_v18 = vpack.c.bf16 %v558_v16, %v556_v7 }
 0x3af   :  { %680 = vmatmul.bf16.gmra.mxu0 %v572_v18 }
 0x3b4   :  { %v561_v21 = vpop.f32.mrf.mxu3 }
 0x3bc   :  { %v563_v24 = vpop.f32.mrf.mxu3 }
 0x3bd   :  { %v573_v25 = vpack.c.bf16 %v563_v24, %v561_v21 }
 0x3bf   :  { %685 = vmatmul.bf16.gmra.mxu0 %v573_v25 }
 0x3cc   :  { %v651_v27 = vpop.f32.mrf.mxu0 }
 0x3cd   :  { %v652_v28 = vadd.f32 %v1560_v26, %v651_v27 }
 0x3cf   :  { %v691_v29 = vmax.f32 %v652_v28, 0.0 }
 0x3d1   :  { %v707_v32 = vpack.c.bf16 %v691_v29, %v691_v29 }
 0x3d3   :  { %v759_v36 = vunpack.c.l.b16 %v707_v32 }
 0x3d4   :  { %v653_v30 = vpop.f32.mrf.mxu0 }
 0x3d5   :  { %v654_v31 = vadd.f32 %v1560_v26, %v653_v30 }
 0x3d7   :  { %v692_v33 = vmax.f32 %v654_v31, 0.0 }
 0x3d9   :  { %v708_v34 = vpack.c.bf16 %v692_v33, %v692_v33  ;;  %v1162_v35 = vpack.c.bf16 %v692_v33, %v691_v29 }
 0x3db   :  { %v760_v37 = vunpack.c.l.b16 %v708_v34  ;;  %1163 = vst [vmem:[#allocation11] sm:$0xff] %v1162_v35  }
 0x3dc   :  { %v656_v38 = vpop.f32.mrf.mxu0 }
 0x3dd   :  { %v775_v39 = vpack.c.b16 %v760_v37, %v759_v36  ;;  %v657_v40 = vadd.f32 %v1560_v26, %v656_v38 }
 0x3df   :  { %847 = vmatmul.bf16.vlgmr.msrb.gmra.mxu1 %v775_v39  ;;  %v693_v41 = vmax.f32 %v657_v40, 0.0 }
 0x3e1   :  { %v709_v44 = vpack.c.bf16 %v693_v41, %v693_v41 }
 0x3e3   :  { %v761_v48 = vunpack.c.l.b16 %v709_v44 }
 0x3e4   :  { %v658_v42 = vpop.f32.mrf.mxu0 }
 0x3e5   :  { %v659_v43 = vadd.f32 %v1560_v26, %v658_v42 }
 0x3e7   :  { %v694_v45 = vmax.f32 %v659_v43, 0.0 }
 0x3e9   :  { %v710_v46 = vpack.c.bf16 %v694_v45, %v694_v45  ;;  %v1167_v47 = vpack.c.bf16 %v694_v45, %v693_v41 }
 0x3eb   :  { %1199 = vst [vmem:[#allocation11 + $0x8] sm:$0xff] %v1167_v47   ;;  %v762_v49 = vunpack.c.l.b16 %v710_v46 }
 0x3ec   :  { %v661_v50 = vpop.f32.mrf.mxu0 }
 0x3ed   :  { %v776_v51 = vpack.c.b16 %v762_v49, %v761_v48  ;;  %v662_v52 = vadd.f32 %v1560_v26, %v661_v50 }
 0x3ef   :  { %852 = vmatmul.bf16.gmra.mxu1 %v776_v51  ;;  %v695_v53 = vmax.f32 %v662_v52, 0.0 }
 0x3f1   :  { %v711_v11 = vpack.c.bf16 %v695_v53, %v695_v53 }
 0x3f3   :  { %v763_v55 = vunpack.c.l.b16 %v711_v11 }
 0x3f4   :  { %v663_v54 = vpop.f32.mrf.mxu0 }
 0x3f5   :  { %v664_v9 = vadd.f32 %v1560_v26, %v663_v54 }
 0x3f7   :  { %v696_v13 = vmax.f32 %v664_v9, 0.0 }
 0x3f9   :  { %v712_v8 = vpack.c.bf16 %v696_v13, %v696_v13  ;;  %v1172_v15 = vpack.c.bf16 %v696_v13, %v695_v53 }
 0x3fb   :  { %1200 = vst [vmem:[#allocation11 + $0x10] sm:$0xff] %v1172_v15   ;;  %v764_v10 = vunpack.c.l.b16 %v712_v8 }
 0x3fc   :  { %v666_v56 = vpop.f32.mrf.mxu0 }
 0x3fd   :  { %v777_v57 = vpack.c.b16 %v764_v10, %v763_v55  ;;  %v667_v58 = vadd.f32 %v1560_v26, %v666_v56 }
 0x3ff   :  { %857 = vmatmul.bf16.gmra.mxu1 %v777_v57  ;;  %v697_v59 = vmax.f32 %v667_v58, 0.0 }
 0x401   :  { %v713_v61 = vpack.c.bf16 %v697_v59, %v697_v59 }
 0x403   :  { %v765_v1 = vunpack.c.l.b16 %v713_v61 }
 0x404   :  { %v668_v60 = vpop.f32.mrf.mxu0 }
 0x405   :  { %v669_v12 = vadd.f32 %v1560_v26, %v668_v60 }
 0x407   :  { %v698_v62 = vmax.f32 %v669_v12, 0.0 }
 0x409   :  { %v714_v63 = vpack.c.bf16 %v698_v62, %v698_v62  ;;  %v1177_v0 = vpack.c.bf16 %v698_v62, %v697_v59 }
 0x40b   :  { %1201 = vst [vmem:[#allocation11 + $0x18] sm:$0xff] %v1177_v0   ;;  %v766_v14 = vunpack.c.l.b16 %v714_v63 }
 0x40c   :  { %v671_v2 = vpop.f32.mrf.mxu0 }
 0x40d   :  { %v778_v3 = vpack.c.b16 %v766_v14, %v765_v1  ;;  %v672_v4 = vadd.f32 %v1560_v26, %v671_v2 }
 0x40f   :  { %862 = vmatmul.bf16.gmra.mxu1 %v778_v3  ;;  %v699_v5 = vmax.f32 %v672_v4, 0.0 }
 0x411   :  { %v715_v17 = vpack.c.bf16 %v699_v5, %v699_v5 }
 0x413   :  { %v767_v20 = vunpack.c.l.b16 %v715_v17 }
 0x414   :  { %v673_v6 = vpop.f32.mrf.mxu0 }
 0x415   :  { %v674_v7 = vadd.f32 %v1560_v26, %v673_v6 }
 0x417   :  { %v700_v16 = vmax.f32 %v674_v7, 0.0 }
 0x419   :  { %v716_v18 = vpack.c.bf16 %v700_v16, %v700_v16  ;;  %v1182_v19 = vpack.c.bf16 %v700_v16, %v699_v5 }
 0x41b   :  { %1202 = vst [vmem:[#allocation11 + $0x20] sm:$0xff] %v1182_v19   ;;  %v768_v21 = vunpack.c.l.b16 %v716_v18 }
 0x41c   :  { %v676_v22 = vpop.f32.mrf.mxu0 }
 0x41d   :  { %v779_v23 = vpack.c.b16 %v768_v21, %v767_v20  ;;  %v677_v24 = vadd.f32 %v1560_v26, %v676_v22 }
 0x41f   :  { %867 = vmatmul.bf16.gmra.mxu1 %v779_v23  ;;  %v701_v25 = vmax.f32 %v677_v24, 0.0 }
 0x421   :  { %v717_v29 = vpack.c.bf16 %v701_v25, %v701_v25 }
 0x423   :  { %v769_v33 = vunpack.c.l.b16 %v717_v29 }
 0x424   :  { %v678_v27 = vpop.f32.mrf.mxu0 }
 0x425   :  { %v679_v28 = vadd.f32 %v1560_v26, %v678_v27 }
 0x427   :  { %v702_v30 = vmax.f32 %v679_v28, 0.0 }
 0x429   :  { %v718_v31 = vpack.c.bf16 %v702_v30, %v702_v30  ;;  %v1187_v32 = vpack.c.bf16 %v702_v30, %v701_v25 }
 0x42b   :  { %1203 = vst [vmem:[#allocation11 + $0x28] sm:$0xff] %v1187_v32   ;;  %v770_v34 = vunpack.c.l.b16 %v718_v31 }
 0x42c   :  { %v681_v35 = vpop.f32.mrf.mxu0 }
 0x42d   :  { %v780_v36 = vpack.c.b16 %v770_v34, %v769_v33  ;;  %v682_v37 = vadd.f32 %v1560_v26, %v681_v35 }
 0x42f   :  { %872 = vmatmul.bf16.gmra.mxu1 %v780_v36  ;;  %v703_v38 = vmax.f32 %v682_v37, 0.0 }
 0x431   :  { %v719_v41 = vpack.c.bf16 %v703_v38, %v703_v38 }
 0x433   :  { %v771_v45 = vunpack.c.l.b16 %v719_v41 }
 0x434   :  { %v683_v39 = vpop.f32.mrf.mxu0 }
 0x435   :  { %v684_v40 = vadd.f32 %v1560_v26, %v683_v39 }
 0x437   :  { %v704_v42 = vmax.f32 %v684_v40, 0.0 }
 0x439   :  { %v720_v43 = vpack.c.bf16 %v704_v42, %v704_v42  ;;  %v1192_v44 = vpack.c.bf16 %v704_v42, %v703_v38 }
 0x43b   :  { %1204 = vst [vmem:[#allocation11 + $0x30] sm:$0xff] %v1192_v44   ;;  %v772_v46 = vunpack.c.l.b16 %v720_v43 }
 0x43c   :  { %v686_v47 = vpop.f32.mrf.mxu0 }
 0x43d   :  { %v781_v48 = vpack.c.b16 %v772_v46, %v771_v45  ;;  %v687_v49 = vadd.f32 %v1560_v26, %v686_v47 }
 0x43f   :  { %877 = vmatmul.bf16.gmra.mxu1 %v781_v48  ;;  %v705_v50 = vmax.f32 %v687_v49, 0.0 }
 0x441   :  { %v721_v53 = vpack.c.bf16 %v705_v50, %v705_v50 }
 0x443   :  { %v773_v13 = vunpack.c.l.b16 %v721_v53 }
 0x444   :  { %v688_v51 = vpop.f32.mrf.mxu0 }
 0x445   :  { %v689_v52 = vadd.f32 %v1560_v26, %v688_v51  ;;  %v1236_v26 = vld [vmem:[%s1598_s8] ss:$0 sm:$0xff]  ;;  %s1423_s8 = smov [#allocation12]  }
 0x446   :  { %s937_s9 = sshll.u32 %s1423_s8, 4  ;;  %s938_s9 = int_to_ptr.vmem [resolvable:$true] %s937_s9 }
 0x447   :  { %v706_v54 = vmax.f32 %v689_v52, 0.0 }
 0x449   :  { %v722_v9 = vpack.c.bf16 %v706_v54, %v706_v54  ;;  %v1197_v11 = vpack.c.bf16 %v706_v54, %v705_v50 }
 0x44b   :  { %1205 = vst [vmem:[#allocation11 + $0x38] sm:$0xff] %v1197_v11   ;;  %v774_v8 = vunpack.c.l.b16 %v722_v9 }
 0x44c   :  { %932 = dma.vmem_to_hbm [thread:$0]  %s925_s19, 1024, %s927_s24, [#allocation4], %s1416_s21, %s1416_s21, %s1417_s22  }
 0x44d   :  { %v782_v15 = vpack.c.b16 %v774_v8, %v773_v13 }
 0x44f   :  { %882 = vmatmul.bf16.gmra.mxu1 %v782_v15 }
 0x45c   :  { %v848_v55 = vpop.f32.mrf.mxu1 }
 0x45d   :  { %v849_v10 = vadd.f32 %v1236_v26, %v848_v55 }
 0x45f   :  { %904 = vst [vmem:[#allocation12] sm:$0xff] %v849_v10 }
 0x464   :  { %v850_v56 = vpop.f32.mrf.mxu1 }
 0x465   :  { %v851_v57 = vadd.f32 %v1236_v26, %v850_v56 }
 0x467   :  { %905 = vst [vmem:[#allocation12 + $0x8] sm:$0xff] %v851_v57 }
 0x46c   :  { %v853_v58 = vpop.f32.mrf.mxu1 }
 0x46d   :  { %v854_v59 = vadd.f32 %v1236_v26, %v853_v58 }
 0x46f   :  { %906 = vst [vmem:[#allocation12 + $0x10] sm:$0xff] %v854_v59 }
 0x474   :  { %v855_v60 = vpop.f32.mrf.mxu1 }
 0x475   :  { %v856_v12 = vadd.f32 %v1236_v26, %v855_v60 }
 0x477   :  { %907 = vst [vmem:[#allocation12 + $0x18] sm:$0xff] %v856_v12 }
 0x47c   :  { %v858_v61 = vpop.f32.mrf.mxu1 }
 0x47d   :  { %v859_v62 = vadd.f32 %v1236_v26, %v858_v61 }
 0x47f   :  { %908 = vst [vmem:[#allocation12 + $0x20] sm:$0xff] %v859_v62 }
 0x484   :  { %v860_v63 = vpop.f32.mrf.mxu1 }
 0x485   :  { %v861_v0 = vadd.f32 %v1236_v26, %v860_v63 }
 0x487   :  { %909 = vst [vmem:[#allocation12 + $0x28] sm:$0xff] %v861_v0 }
 0x48c   :  { %v863_v1 = vpop.f32.mrf.mxu1 }
 0x48d   :  { %v864_v14 = vadd.f32 %v1236_v26, %v863_v1 }
 0x48f   :  { %910 = vst [vmem:[#allocation12 + $0x30] sm:$0xff] %v864_v14 }
 0x494   :  { %v865_v2 = vpop.f32.mrf.mxu1 }
 0x495   :  { %v866_v3 = vadd.f32 %v1236_v26, %v865_v2 }
 0x497   :  { %911 = vst [vmem:[#allocation12 + $0x38] sm:$0xff] %v866_v3 }
 0x49c   :  { %v868_v4 = vpop.f32.mrf.mxu1 }
 0x49d   :  { %v869_v5 = vadd.f32 %v1236_v26, %v868_v4 }
 0x49f   :  { %912 = vst [vmem:[#allocation12 + $0x40] sm:$0xff] %v869_v5 }
 0x4a4   :  { %v870_v6 = vpop.f32.mrf.mxu1 }
 0x4a5   :  { %v871_v7 = vadd.f32 %v1236_v26, %v870_v6 }
 0x4a7   :  { %913 = vst [vmem:[#allocation12 + $0x48] sm:$0xff] %v871_v7 }
 0x4ac   :  { %v873_v17 = vpop.f32.mrf.mxu1 }
 0x4ad   :  { %v874_v16 = vadd.f32 %v1236_v26, %v873_v17 }
 0x4af   :  { %914 = vst [vmem:[#allocation12 + $0x50] sm:$0xff] %v874_v16 }
 0x4b4   :  { %v875_v18 = vpop.f32.mrf.mxu1 }
 0x4b5   :  { %v876_v19 = vadd.f32 %v1236_v26, %v875_v18 }
 0x4b7   :  { %915 = vst [vmem:[#allocation12 + $0x58] sm:$0xff] %v876_v19 }
 0x4bc   :  { %v878_v20 = vpop.f32.mrf.mxu1 }
 0x4bd   :  { %v879_v21 = vadd.f32 %v1236_v26, %v878_v20 }
 0x4bf   :  { %916 = vst [vmem:[#allocation12 + $0x60] sm:$0xff] %v879_v21 }
 0x4c4   :  { %v880_v22 = vpop.f32.mrf.mxu1 }
 0x4c5   :  { %v881_v23 = vadd.f32 %v1236_v26, %v880_v22 }
 0x4c7   :  { %917 = vst [vmem:[#allocation12 + $0x68] sm:$0xff] %v881_v23 }
 0x4cc   :  { %v883_v24 = vpop.f32.mrf.mxu1 }
 0x4cd   :  { %v884_v25 = vadd.f32 %v1236_v26, %v883_v24 }
 0x4cf   :  { %918 = vst [vmem:[#allocation12 + $0x70] sm:$0xff] %v884_v25 }
 0x4d4   :  { %v885_v27 = vpop.f32.mrf.mxu1 }
 0x4d5   :  { %v886_v28 = vadd.f32 %v1236_v26, %v885_v27 }
 0x4d7   :  { %919 = vst [vmem:[#allocation12 + $0x78] sm:$0xff] %v886_v28 }
 0x4d8   :  { %945 = dma.vmem_to_hbm [thread:$0]  %s938_s9, 2048, %s940_s1, [#allocation13], %s1424_s5, %s1424_s5, %s1425_s27  }
 0x4d9   :  { %1411 = dma.done.wait [#allocation4], 1024  }
 0x4da   :  { %1412 = vsyncadd [#allocation4], 4294966272 }
 0x4db   :  { %1413 = dma.done.wait [#allocation13], 2048  }
 0x4dc   :  { %1414 = vsyncadd [#allocation13], 4294965248 }
 0x4dd   :  { %954 = vsyncpa [#allocation3], 1 }
 0x4de   :  { %955 = vsyncpa [#allocation6], 1 }
 0x4df   :  { %956 = vsyncpa [#allocation9], 1 }
 0x4e0   :  { %957 = vsyncpa [#allocation4], 1 }
 0x4e1   :  { %958 = vsyncpa [#allocation13], 1 }

</bundles_post_ra>
